<compile_context>
chip_gen: v6e
topology: v6e:2x2x1
jax: 0.10.0
libtpu: 0.0.40
codegen_flags: <defaults>
</compile_context>

<pallas_src>
import jax
import jax.numpy as jnp
from jax.experimental import pallas as pl
from jax.experimental.pallas import tpu as pltpu


LANE = 128                              # vreg lane width (last dim)
TARGET_BLOCK_BYTES = 4 * 1024 * 1024    # ~4 MiB per buffer
MIN_BLOCK_BYTES = 1 * 1024 * 1024       # don't shrink blocks below ~1 MiB
TARGET_GRID_STEPS = 8                   # >= 4 steps per TC on v7x (2 TCs)


def _silu_kernel(x_ref, o_ref):
    # f32 compute path: required on v5e (no bf16 VPU/EUP) and matches
    # torch.sigmoid numerics; kernel is mem-bound so the upcast is free.
    xf = x_ref[...].astype(jnp.float32)
    o_ref[...] = (xf * jax.nn.sigmoid(xf)).astype(o_ref.dtype)


def _round_up(a, b):
    return ((a + b - 1) // b) * b


def _choose_tiling(rows, itemsize):
    """Pick (block_rows, grid_len) for a (rows, 128) slab."""
    row_bytes = LANE * itemsize
    # Dtype-packed sublane multiple: f32 -> 8, bf16 -> 16, int8/fp8 -> 32.
    sublane = max(8, 32 // itemsize)
    max_rows = max(sublane, (TARGET_BLOCK_BYTES // row_bytes) // sublane * sublane)
    min_rows = max(sublane, (MIN_BLOCK_BYTES // row_bytes) // sublane * sublane)

    if rows <= sublane or rows * row_bytes <= MIN_BLOCK_BYTES:
        # Small input: one full-extent block (block_shape == array dims is legal).
        return rows, 1

    # >= TARGET_GRID_STEPS steps while each block stays >= ~1 MiB; cap at ~4 MiB.
    per_step = _round_up(pl.cdiv(rows, TARGET_GRID_STEPS), sublane)
    block_rows = min(max_rows, max(min_rows, per_step))
    grid_len = pl.cdiv(rows, block_rows)

    # Even grid length so v7x's two TensorCores get balanced work.
    if grid_len > 1 and grid_len % 2 == 1:
        cand = max(sublane, _round_up(pl.cdiv(rows, grid_len + 1), sublane))
        if pl.cdiv(rows, cand) % 2 == 0:
            block_rows = cand
            grid_len = pl.cdiv(rows, cand)

    return block_rows, grid_len


def _vmem_limit(block_rows, itemsize):
    block_bytes = block_rows * LANE * itemsize
    # 2 arrays (in + out) x 2 buffers (double-buffer) x block + headroom.
    # Clamp above v5e's 16 MiB default scoped limit, below ~48 MiB so the
    # pipeline never threatens v7x's 64 MiB physical VMEM.
    return int(min(48 * 2**20, max(32 * 2**20, 4 * block_bytes + 16 * 2**20)))


def _silu_2d(x2d, block_rows, grid_len, vmem_limit_bytes):
    rows, lanes = x2d.shape
    return pl.pallas_call(
        _silu_kernel,
        out_shape=jax.ShapeDtypeStruct((rows, lanes), x2d.dtype),
        grid_spec=pltpu.PrefetchScalarGridSpec(
            num_scalar_prefetch=0,
            grid=(grid_len,),
            in_specs=[pl.BlockSpec((block_rows, lanes), lambda i: (i, 0))],
            out_specs=pl.BlockSpec((block_rows, lanes), lambda i: (i, 0)),
        ),
        compiler_params=pltpu.CompilerParams(
            dimension_semantics=("parallel",),
            vmem_limit_bytes=vmem_limit_bytes,
        ),
    )(x2d)


def silu_pallas(x):
    """SiLU over an arbitrarily-shaped array via a Pallas TPU kernel."""
    orig_shape = x.shape
    dtype = x.dtype
    n = x.size
    if n == 0:
        return x

    itemsize = jnp.dtype(dtype).itemsize
    flat = x.reshape(-1)

    if n < LANE:
        # Tiny input: a single (1, n) full-extent block.
        y = _silu_2d(flat.reshape(1, n), 1, 1, _vmem_limit(8, itemsize))
        return y.reshape(orig_shape)

    n_aligned = (n // LANE) * LANE
    rows = n_aligned // LANE
    block_rows, grid_len = _choose_tiling(rows, itemsize)
    vmem_limit = _vmem_limit(block_rows, itemsize)

    if n_aligned == n:
        # Common path: free metadata reshape, no extra HBM passes.
        y = _silu_2d(flat.reshape(rows, LANE), block_rows, grid_len, vmem_limit)
        return y.reshape(orig_shape)

    # Odd size: run the kernel on the 128-aligned prefix and compute the
    # < 128-element tail with plain jnp (avoids the pad + trailing-slice pair,
    # each of which is a full extra HBM pass on this bandwidth-bound op).
    y_main = _silu_2d(
        flat[:n_aligned].reshape(rows, LANE), block_rows, grid_len, vmem_limit
    ).reshape(n_aligned)
    tail = flat[n_aligned:].astype(jnp.float32)
    y_tail = (tail * jax.nn.sigmoid(tail)).astype(dtype)
    return jnp.concatenate([y_main, y_tail]).reshape(orig_shape)


if __name__ == "__main__":
    def ref_silu(v):
        vf = v.astype(jnp.float32)
        return (vf * jax.nn.sigmoid(vf)).astype(v.dtype)

    # Primary: module-scale NCHW input (2048 elems -> single-block path).
    x = jax.random.normal(jax.random.PRNGKey(0), (2, 4, 16, 16), dtype=jnp.float32)
    y = jax.block_until_ready(silu_pallas(x))
    assert y.shape == x.shape and y.dtype == x.dtype
    assert jnp.allclose(y, ref_silu(x), atol=1e-6, rtol=1e-6)

    # Odd element count: exercises the aligned-prefix kernel + jnp-tail path.
    x2 = jax.random.normal(jax.random.PRNGKey(1), (2, 3, 16, 17), dtype=jnp.float32)
    y2 = jax.block_until_ready(silu_pallas(x2))
    assert y2.shape == x2.shape and y2.dtype == x2.dtype
    assert jnp.allclose(y2, ref_silu(x2), atol=1e-6, rtol=1e-6)

    # Medium input (4 MiB): exercises the multi-step, even-length grid path.
    x3 = jax.random.normal(jax.random.PRNGKey(2), (64, 4, 64, 64), dtype=jnp.float32)
    y3 = jax.block_until_ready(silu_pallas(x3))
    assert y3.shape == x3.shape and y3.dtype == x3.dtype
    assert jnp.allclose(y3, ref_silu(x3), atol=1e-6, rtol=1e-6)

    # bf16 input: exercises dtype-aware sublane rounding and the f32 compute path.
    x4 = jax.random.normal(jax.random.PRNGKey(3), (2, 4, 16, 16), dtype=jnp.bfloat16)
    y4 = jax.block_until_ready(silu_pallas(x4))
    assert y4.shape == x4.shape and y4.dtype == jnp.bfloat16
    assert jnp.allclose(y4.astype(jnp.float32),
                        ref_silu(x4).astype(jnp.float32), atol=2e-2, rtol=2e-2)

    print("KERNEL_OK")
</pallas_src>

<mosaic_0001>
module attributes {stable_mosaic.version = 11 : i64} {
  func.func @_silu_kernel(%arg0: i32, %arg1: memref<16x128xf32, #tpu.memory_space<vmem>>, %arg2: memref<16x128xf32, #tpu.memory_space<vmem>>) attributes {dimension_semantics = [#tpu.dimension_semantics<parallel>], iteration_bounds = array<i64: 1>, scalar_prefetch = 0 : i64, scratch_operands = 0 : i64, tpu.core_type = #tpu.core_type<tc>, window_params = [{transform_indices = @transform_0, window_bounds = array<i64: 16, 128>}, {transform_indices = @transform_1, window_bounds = array<i64: 16, 128>}]} {
    %c0 = arith.constant 0 : index
    %c0_0 = arith.constant 0 : index
    %0 = vector.load %arg1[%c0, %c0_0] : memref<16x128xf32, #tpu.memory_space<vmem>>, vector<16x128xf32>
    %1 = arith.negf %0 : vector<16x128xf32>
    %2 = math.exp %1 : vector<16x128xf32>
    %cst = arith.constant 1.000000e+00 : f32
    %3 = vector.broadcast %cst : f32 to vector<16x128xf32>
    %4 = arith.addf %3, %2 : vector<16x128xf32>
    %5 = arith.divf %3, %4 : vector<16x128xf32>
    %6 = arith.mulf %0, %5 : vector<16x128xf32>
    %c0_1 = arith.constant 0 : index
    %c0_2 = arith.constant 0 : index
    %7 = vector.load %arg2[%c0_1, %c0_2] : memref<16x128xf32, #tpu.memory_space<vmem>>, vector<16x128xf32>
    tpu.vector_store %arg2[%c0_1, %c0_2], %6 {strides = array<i32>} : memref<16x128xf32, #tpu.memory_space<vmem>>, vector<16x128xf32>,
    return
  }
  func.func @transform_0(%arg0: i32) -> (i32, i32) {
    %c0_i32 = arith.constant 0 : i32
    %c0_i32_0 = arith.constant 0 : i32
    return %arg0, %c0_i32 : i32, i32
  }
  func.func @transform_1(%arg0: i32) -> (i32, i32) {
    %c0_i32 = arith.constant 0 : i32
    %c0_i32_0 = arith.constant 0 : i32
    return %arg0, %c0_i32 : i32, i32
  }
}

</mosaic_0001>

<bundles_post_ra>
// kernel: tpu_custom_call.1
= control target key start
LH: loop header
LB: loop body
LE: loop exit
PB: predicated region body
PF: predicated region fallthrough
CT: control target
= control target key end

     0   :  { %6 = vsyncpa [#allocation3], 0  ;;  %s142_s0 = inlined_call_operand.hbm [shape: f32[16,128], index: 0, kind: input, shape index: {}]   ;;  %s143_s1 = inlined_call_operand.hbm [shape: f32[16,128], index: 1, kind: output, shape index: {}]  }
   0x1   :  { %7 = vsyncpa [#allocation4], 0  ;;  %s116_s6 = smov [#allocation2]  }
   0x2   :  { %s13_s7 = sshll.u32 %s116_s6, 4  ;;  %s14_s7 = int_to_ptr.vmem [resolvable:$true] %s13_s7 }
   0x3   :  { %s80_s8 = scalar_lea.vmem %s14_s7, 256  ;;  %p85_p1 = scmp.lt.s32.totalorder %s14_s7, %s14_s7 }
   0x4   :  { %p81_p0 = scmp.ne.s32.totalorder %s14_s7, %s80_s8  ;;  %p86_p2 = scmp.lt.s32.totalorder %s80_s8, %s80_s8 }
   0x6   :  { %p87_p3 = por %p86_p2, %p85_p1 }
   0x8   :  { %p88_p4 = pnand %p87_p3, %p81_p0 }
   0xa   :  { %91 = shalt.err (!%p88_p4)
}
   0xb   :  { %s117_s9 = smov 128   ;;  %s118_s10 = smov 8  }
   0xc   :  { %19 = dma.hbm_to_vmem [thread:$0]  %s142_s0, 256, %s14_s7, [#allocation3], %s117_s9, %s117_s9, %s118_s10  }
   0xd   :  { %112 = dma.done.wait [#allocation3], 256  }
   0xe   :  { %113 = vsyncadd [#allocation3], 4294967040  ;;  %v23_v0 = vld [vmem:[#allocation2] sm:$0xff]  ;;  %v24_v1 = vld [vmem:[#allocation2 + $0x8] sm:$0xff]  ;;  %s119_s13 = smov [#allocation5]  }
   0xf   :  { %v58_v2 = vmul.f32 -1.442695, %v23_v0  ;;  %v59_v3 = vmul.f32 -1.442695, %v24_v1  ;;  %s46_s14 = sshll.u32 %s119_s13, 4  ;;  %s47_s14 = int_to_ptr.vmem [resolvable:$true] %s46_s14 }
  0x10   :  { %s92_s0 = scalar_lea.vmem %s47_s14, 256  ;;  %p97_p6 = scmp.lt.s32.totalorder %s47_s14, %s47_s14 }
  0x11   :  { %64 = vpow2.f32 %v58_v2  ;;  %p93_p5 = scmp.ne.s32.totalorder %s47_s14, %s92_s0  ;;  %p98_p7 = scmp.lt.s32.totalorder %s92_s0, %s92_s0 }
  0x12   :  { %66 = vpow2.f32 %v59_v3 }
  0x13   :  { %p99_p8 = por %p98_p7, %p97_p6 }
  0x15   :  { %p100_p9 = pnand %p99_p8, %p93_p5 }
  0x1e   :  { %v65_v4 = vpop.eup %64 }
  0x1f   :  { %v67_v5 = vpop.eup %66  ;;  %v31_v6 = vadd.f32 1.0, %v65_v4 }
  0x20   :  { %v32_v7 = vadd.f32 1.0, %v67_v5 }
  0x21   :  { %68 = vrcp.f32 %v31_v6 }
  0x22   :  { %70 = vrcp.f32 %v32_v7 }
  0x2e   :  { %v69_v8 = vpop.eup %68 }
  0x2f   :  { %v71_v9 = vpop.eup %70  ;;  %v37_v10 = vmul.f32 %v69_v8, %v23_v0 }
  0x30   :  { %v38_v11 = vmul.f32 %v71_v9, %v24_v1 }
  0x31   :  { %39 = vst [vmem:[#allocation5] sm:$0xff] %v37_v10 }
  0x32   :  { %40 = vst [vmem:[#allocation5 + $0x8] sm:$0xff] %v38_v11 }
  0x33   :  { %103 = shalt.err (!%p100_p9)
}
  0x34   :  { %52 = dma.vmem_to_hbm [thread:$0]  %s47_s14, 256, %s143_s1, [#allocation4], %s117_s9, %s117_s9, %s118_s10  }
  0x35   :  { %114 = dma.done.wait [#allocation4], 256  }
  0x36   :  { %115 = vsyncadd [#allocation4], 4294967040 }
  0x37   :  { %56 = vsyncpa [#allocation3], 1 }
  0x38   :  { %57 = vsyncpa [#allocation4], 1 }

</bundles_post_ra>
